<compile_context>
chip_gen: v6e
topology: v6e:2x2x1
jax: 0.10.0
libtpu: 0.0.40
codegen_flags: <defaults>
</compile_context>

<pallas_src>
import jax
import jax.numpy as jnp
from jax import lax
from jax.experimental import pallas as pl
from jax.experimental.pallas import tpu as pltpu


# ----------------------------- configuration -----------------------------
IN_CHANNELS = 4          # C_in
OUT_CHANNELS = 8         # num classes (fc out)
LOSS_WEIGHT = 0.5
BN_EPS = 1e-5

N, T, H, W = 2, 4, 16, 16
C2 = IN_CHANNELS * 2     # conv out channels
KH = KW = 3
STRIDE = 2
PAD = 1
H_OUT = (H + 2 * PAD - KH) // STRIDE + 1
W_OUT = (W + 2 * PAD - KW) // STRIDE + 1
P = T * H_OUT * W_OUT            # pooled positions per sample (256)
F = KH * KW * IN_CHANNELS        # im2col feature length (36)
F_PAD = 48                       # bf16 sublane multiple (16) >= F + 1 (ones-row at F)


# ------------------------------- kernel ----------------------------------
def aux_head_kernel(tgt_ref, patch_ref, wmat_ref, fc_ref, loss_ref):
    """Fused conv-GEMM(+folded BN) -> ReLU -> avg-pool -> FC(+bias) -> CE loss."""
    n = tgt_ref.shape[0]
    np_cols = patch_ref.shape[1]
    p = np_cols // n
    c2 = wmat_ref.shape[0]
    k = fc_ref.shape[0]

    # Conv + BN(eval, folded: scale in rows, shift via ones-row column) as ONE
    # lane-dense GEMM: (C2, F_PAD) x (F_PAD, N*P) -> (C2, N*P), bf16 in / f32 acc.
    y = jnp.dot(wmat_ref[...], patch_ref[...],
                preferred_element_type=jnp.float32)
    y = jnp.maximum(y, 0.0)                                     # ReLU, f32

    # Per-sample global average pool: static lane-aligned column slices + XLU
    # cross-lane sums (no f32 MXU seg-matrix GEMM, no extra operand).
    cols = [jnp.sum(y[:, i * p:(i + 1) * p], axis=1, keepdims=True)
            for i in range(n)]                                  # n x (C2, 1)
    pooled = jnp.concatenate(cols, axis=1) * (1.0 / p)          # (C2, n) f32

    # Dropout: eval mode -> identity.  TODO(synk): train-mode dropout mask.
    # FC: weight and bias live in one operand; static lane slices.
    fcw = fc_ref[:, :c2]                                        # (K, C2)
    fcb = fc_ref[:, c2:c2 + 1]                                  # (K, 1)
    logits = jnp.dot(fcw, pooled,
                     preferred_element_type=jnp.float32) + fcb  # (K, n) f32

    # Softmax cross-entropy over the class axis (0), mean over batch.
    m = jnp.max(logits, axis=0, keepdims=True)                  # (1, n)
    lse = m + jnp.log(jnp.sum(jnp.exp(logits - m), axis=0, keepdims=True))
    cls_iota = lax.broadcasted_iota(jnp.int32, (k, 1), 0)       # (K, 1)
    picked = 0.0
    for i in range(n):                                          # targets from SMEM
        picked += jnp.sum(jnp.where(cls_iota == tgt_ref[i],
                                    logits[:, i:i + 1], 0.0))
    loss_ref[0] = LOSS_WEIGHT * (jnp.sum(lse) - picked) / n     # scalar -> SMEM


# ------------------------------- glue (JAX) --------------------------------
def build_patches(x_bf16):
    """(N,C,T,H,W) bf16 -> (F_PAD, N*P) bf16.

    Rows 0..F-1: im2col (row = tap*C + c, col = n*P + p); row F: ones (for the
    folded BN shift); rows F+1..F_PAD-1: zeros (bf16 tile alignment).
    """
    n = x_bf16.shape[0]
    xp = jnp.pad(x_bf16, ((0, 0), (0, 0), (0, 0), (PAD, PAD), (PAD, PAD)))
    taps = [xp[:, :, :, i:i + STRIDE * H_OUT:STRIDE, j:j + STRIDE * W_OUT:STRIDE]
            for i in range(KH) for j in range(KW)]      # 9 x (N,C,T,Ho,Wo)
    pat = jnp.stack(taps, axis=0)                       # (9, N, C, T, Ho, Wo)
    pat = jnp.transpose(pat, (0, 2, 1, 3, 4, 5)).reshape(F, n * P)
    ones_row = jnp.ones((1, n * P), jnp.bfloat16)
    pad_rows = jnp.zeros((F_PAD - F - 1, n * P), jnp.bfloat16)
    return jnp.concatenate([pat, ones_row, pad_rows], axis=0)


def make_params(key):
    k_conv, k_g, k_b, k_m, k_v, k_fc = jax.random.split(key, 6)
    fan_in = IN_CHANNELS * KH * KW
    fan_out = C2 * KH * KW
    bound = (6.0 / (fan_in + fan_out)) ** 0.5
    conv_w = jax.random.uniform(k_conv, (C2, IN_CHANNELS, 1, KH, KW),
                                jnp.float32, -bound, bound)
    bn_gamma = 1.0 + 0.1 * jax.random.normal(k_g, (C2,), jnp.float32)
    bn_beta = 0.1 * jax.random.normal(k_b, (C2,), jnp.float32)
    bn_mean = 0.1 * jax.random.normal(k_m, (C2,), jnp.float32)
    bn_var = 1.0 + 0.1 * jax.random.uniform(k_v, (C2,), jnp.float32)
    fc_w = 0.01 * jax.random.normal(k_fc, (OUT_CHANNELS, C2), jnp.float32)
    fc_b = jnp.zeros((OUT_CHANNELS,), jnp.float32)
    return dict(conv_w=conv_w, bn_gamma=bn_gamma, bn_beta=bn_beta,
                bn_mean=bn_mean, bn_var=bn_var, fc_w=fc_w, fc_b=fc_b)


def _fold_conv_bn(conv_w, bn_gamma, bn_beta, bn_mean, bn_var):
    """Fold eval-mode BN into a (C2, F_PAD) bf16 GEMM matrix (fold in f32 first)."""
    scale = bn_gamma / jnp.sqrt(bn_var + BN_EPS)                 # (C2,)
    shift = bn_beta - bn_mean * scale                            # (C2,)
    w = conv_w[:, :, 0, :, :]                                    # (C2, Cin, 3, 3)
    wmat = jnp.transpose(w, (0, 2, 3, 1)).reshape(C2, F) * scale[:, None]
    wmat_aug = (jnp.zeros((C2, F_PAD), jnp.float32)
                .at[:, :F].set(wmat)
                .at[:, F].set(shift))                            # shift * ones-row
    return wmat_aug.astype(jnp.bfloat16)


@jax.jit
def _aux_head_loss_jit(x, target, conv_w, bn_gamma, bn_beta, bn_mean, bn_var,
                       fc_w, fc_b):
    n = x.shape[0]
    np_cols = n * P

    wmat_aug = _fold_conv_bn(conv_w, bn_gamma, bn_beta, bn_mean, bn_var)  # (C2,F_PAD) bf16
    fc_aug = jnp.concatenate([fc_w, fc_b[:, None]], axis=1)               # (K, C2+1) f32
    patches = build_patches(x.astype(jnp.bfloat16))                       # (F_PAD, n*P) bf16

    flops = 2 * C2 * F_PAD * np_cols + 2 * OUT_CHANNELS * C2 * n
    bytes_accessed = (patches.size * 2 + wmat_aug.size * 2
                      + fc_aug.size * 4 + n * 4 + 4)
    transcendentals = OUT_CHANNELS * n + n                                # exp + log

    loss = pl.pallas_call(
        aux_head_kernel,
        out_shape=jax.ShapeDtypeStruct((1,), jnp.float32),
        in_specs=[
            pl.BlockSpec(memory_space=pltpu.MemorySpace.SMEM),      # target (int32)
            pl.BlockSpec((F_PAD, np_cols), lambda: (0, 0)),         # im2col patches
            pl.BlockSpec((C2, F_PAD), lambda: (0, 0)),              # conv+BN folded
            pl.BlockSpec((OUT_CHANNELS, C2 + 1), lambda: (0, 0)),   # fc [W | b]
        ],
        out_specs=pl.BlockSpec(memory_space=pltpu.MemorySpace.SMEM),
        cost_estimate=pl.CostEstimate(flops=flops,
                                      bytes_accessed=bytes_accessed,
                                      transcendentals=transcendentals),
    )(target.astype(jnp.int32), patches, wmat_aug, fc_aug)
    return loss[0]


def aux_head_forward(params, x, target=None):
    """Mirrors AuxHead.forward: {} if target is None, else {'loss_aux': ...}."""
    losses = {}
    if target is None:
        return losses
    target = jnp.atleast_1d(target)
    losses["loss_aux"] = _aux_head_loss_jit(
        x, target, params["conv_w"], params["bn_gamma"], params["bn_beta"],
        params["bn_mean"], params["bn_var"], params["fc_w"], params["fc_b"])
    return losses


# --------------------------- pure-JAX references ---------------------------
def reference_loss_matched(params, x, target):
    """Same numerics as the kernel (folded bf16 GEMM inputs, f32 elsewhere)."""
    n = x.shape[0]
    wmat_aug = _fold_conv_bn(params["conv_w"], params["bn_gamma"], params["bn_beta"],
                             params["bn_mean"], params["bn_var"])
    patches = build_patches(x.astype(jnp.bfloat16))
    y = jnp.dot(wmat_aug.astype(jnp.float32), patches.astype(jnp.float32))
    y = jnp.maximum(y, 0.0)
    pooled = y.reshape(C2, n, P).mean(axis=-1)                    # (C2, N)
    logits = (params["fc_w"] @ pooled + params["fc_b"][:, None]).T
    logp = jax.nn.log_softmax(logits, axis=-1)
    nll = -logp[jnp.arange(n), target]
    return LOSS_WEIGHT * nll.mean()


def reference_loss_f32(params, x, target):
    """Full-f32 reference following the PyTorch module (real conv)."""
    n = x.shape[0]
    y = lax.conv_general_dilated(
        x, params["conv_w"], window_strides=(1, STRIDE, STRIDE),
        padding=((0, 0), (PAD, PAD), (PAD, PAD)),
        dimension_numbers=("NCDHW", "OIDHW", "NCDHW"))
    scale = params["bn_gamma"] / jnp.sqrt(params["bn_var"] + BN_EPS)
    shift = params["bn_beta"] - params["bn_mean"] * scale
    y = jnp.maximum(y * scale[None, :, None, None, None]
                    + shift[None, :, None, None, None], 0.0)
    pooled = y.mean(axis=(2, 3, 4))                               # (N, C2)
    logits = pooled @ params["fc_w"].T + params["fc_b"]
    logp = jax.nn.log_softmax(logits, axis=-1)
    nll = -logp[jnp.arange(n), target]
    return LOSS_WEIGHT * nll.mean()


# --------------------------------- main -------------------------------------
if __name__ == "__main__":
    key = jax.random.PRNGKey(0)
    k_x, k_t, k_p = jax.random.split(key, 3)

    x = jax.random.normal(k_x, (N, IN_CHANNELS, T, H, W), jnp.float32)
    target = jax.random.randint(k_t, (N,), 0, OUT_CHANNELS, jnp.int32)
    params = make_params(k_p)

    # target=None path (returns empty dict, as in the PyTorch module).
    assert aux_head_forward(params, x, None) == {}

    losses = aux_head_forward(params, x, target)
    loss = jax.block_until_ready(losses["loss_aux"])

    ref = reference_loss_matched(params, x, target)
    assert jnp.allclose(loss, ref, rtol=1e-3, atol=1e-4), (loss, ref)

    ref32 = reference_loss_f32(params, x, target)
    assert jnp.allclose(loss, ref32, rtol=5e-3, atol=2e-3), (loss, ref32)

    print("KERNEL_OK")
</pallas_src>

<mosaic_0001>
module attributes {stable_mosaic.version = 11 : i64} {
  func.func @aux_head_kernel(%arg0: memref<2xi32, #tpu.memory_space<smem>>, %arg1: memref<48x512xbf16, #tpu.memory_space<vmem>>, %arg2: memref<8x48xbf16, #tpu.memory_space<vmem>>, %arg3: memref<8x9xf32, #tpu.memory_space<vmem>>, %arg4: memref<1xf32, #tpu.memory_space<smem>>) attributes {dimension_semantics = [], scalar_prefetch = 0 : i64, scratch_operands = 0 : i64, tpu.core_type = #tpu.core_type<tc>} {
    %c0 = arith.constant 0 : index
    %c0_0 = arith.constant 0 : index
    %0 = vector.load %arg2[%c0, %c0_0] : memref<8x48xbf16, #tpu.memory_space<vmem>>, vector<8x48xbf16>
    %c0_1 = arith.constant 0 : index
    %c0_2 = arith.constant 0 : index
    %1 = vector.load %arg1[%c0_1, %c0_2] : memref<48x512xbf16, #tpu.memory_space<vmem>>, vector<48x512xbf16>
    %cst = arith.constant dense<0.000000e+00> : vector<8x512xf32>
    %2 = tpu.matmul %0, %1, %cst {dimension_numbers = #tpu.dot_dimension_numbers<[1], [0], [0], [1], [0, 0, 1, 1], [], []>} : vector<8x48xbf16>, vector<48x512xbf16>, vector<8x512xf32> -> vector<8x512xf32>
    %cst_3 = arith.constant 0.000000e+00 : f32
    %3 = vector.broadcast %cst_3 : f32 to vector<8x512xf32>
    %4 = arith.maximumf %2, %3 : vector<8x512xf32>
    %5 = vector.extract_strided_slice %4 {offsets = [0, 0], sizes = [8, 256], strides = [1, 1]} : vector<8x512xf32> to vector<8x256xf32>
    %cst_4 = arith.constant dense<0.000000e+00> : vector<8xf32>
    %6 = vector.multi_reduction <add>, %5, %cst_4 [1] : vector<8x256xf32> to vector<8xf32>
    %7 = vector.shape_cast %6 : vector<8xf32> to vector<8x1xf32>
    %8 = vector.extract_strided_slice %4 {offsets = [0, 256], sizes = [8, 256], strides = [1, 1]} : vector<8x512xf32> to vector<8x256xf32>
    %cst_5 = arith.constant dense<0.000000e+00> : vector<8xf32>
    %9 = vector.multi_reduction <add>, %8, %cst_5 [1] : vector<8x256xf32> to vector<8xf32>
    %10 = vector.shape_cast %9 : vector<8xf32> to vector<8x1xf32>
    %11 = tpu.concatenate %7, %10 in 1 : vector<8x1xf32>, vector<8x1xf32> -> vector<8x2xf32>
    %cst_6 = arith.constant 3.906250e-03 : f32
    %12 = vector.broadcast %cst_6 : f32 to vector<8x2xf32>
    %13 = arith.mulf %11, %12 : vector<8x2xf32>
    %c0_7 = arith.constant 0 : index
    %c0_8 = arith.constant 0 : index
    %14 = vector.load %arg3[%c0_7, %c0_8] : memref<8x9xf32, #tpu.memory_space<vmem>>, vector<8x8xf32>
    %c0_9 = arith.constant 0 : index
    %c8 = arith.constant 8 : index
    %15 = vector.load %arg3[%c0_9, %c8] : memref<8x9xf32, #tpu.memory_space<vmem>>, vector<8x1xf32>
    %cst_10 = arith.constant dense<0.000000e+00> : vector<8x2xf32>
    %16 = tpu.matmul %14, %13, %cst_10 {dimension_numbers = #tpu.dot_dimension_numbers<[1], [0], [0], [1], [0, 0, 1, 1], [], []>} : vector<8x8xf32>, vector<8x2xf32>, vector<8x2xf32> -> vector<8x2xf32>
    %17 = vector.broadcast %15 : vector<8x1xf32> to vector<8x2xf32>
    %18 = arith.addf %16, %17 : vector<8x2xf32>
    %cst_11 = arith.constant dense<0xFF800000> : vector<2xf32>
    %19 = vector.multi_reduction <maximumf>, %18, %cst_11 [0] : vector<8x2xf32> to vector<2xf32>
    %20 = vector.shape_cast %19 : vector<2xf32> to vector<1x2xf32>
    %21 = vector.broadcast %20 : vector<1x2xf32> to vector<8x2xf32>
    %22 = arith.subf %18, %21 : vector<8x2xf32>
    %23 = math.exp %22 : vector<8x2xf32>
    %cst_12 = arith.constant dense<0.000000e+00> : vector<2xf32>
    %24 = vector.multi_reduction <add>, %23, %cst_12 [0] : vector<8x2xf32> to vector<2xf32>
    %25 = vector.shape_cast %24 : vector<2xf32> to vector<1x2xf32>
    %26 = math.log %25 : vector<1x2xf32>
    %27 = arith.addf %20, %26 : vector<1x2xf32>
    %28 = tpu.iota {dimensions = array<i32: 0>} : vector<8x1xi32>
    %c0_13 = arith.constant 0 : index
    %29 = memref.load %arg0[%c0_13] : memref<2xi32, #tpu.memory_space<smem>>
    %30 = vector.broadcast %29 : i32 to vector<8x1xi32>
    %31 = arith.cmpi eq, %28, %30 : vector<8x1xi32>
    %32 = vector.extract_strided_slice %18 {offsets = [0, 0], sizes = [8, 1], strides = [1, 1]} : vector<8x2xf32> to vector<8x1xf32>
    %cst_14 = arith.constant 0.000000e+00 : f32
    %33 = vector.broadcast %cst_14 : f32 to vector<8x1xf32>
    %34 = arith.select %31, %32, %33 : vector<8x1xi1>, vector<8x1xf32>
    %35 = vector.shape_cast %34 : vector<8x1xf32> to vector<1x8x1xf32>
    %cst_15 = arith.constant dense<0.000000e+00> : vector<1xf32>
    %36 = vector.multi_reduction <add>, %35, %cst_15 [1, 2] : vector<1x8x1xf32> to vector<1xf32>
    %37 = vector.shape_cast %36 : vector<1xf32> to vector<1x1x1xf32>
    %38 = vector.extract %37[0, 0, 0] : f32 from vector<1x1x1xf32>
    %cst_16 = arith.constant 0.000000e+00 : f32
    %39 = arith.addf %cst_16, %38 : f32
    %c1 = arith.constant 1 : index
    %40 = memref.load %arg0[%c1] : memref<2xi32, #tpu.memory_space<smem>>
    %41 = vector.broadcast %40 : i32 to vector<8x1xi32>
    %42 = arith.cmpi eq, %28, %41 : vector<8x1xi32>
    %43 = vector.extract_strided_slice %18 {offsets = [0, 1], sizes = [8, 1], strides = [1, 1]} : vector<8x2xf32> to vector<8x1xf32>
    %cst_17 = arith.constant 0.000000e+00 : f32
    %44 = vector.broadcast %cst_17 : f32 to vector<8x1xf32>
    %45 = arith.select %42, %43, %44 : vector<8x1xi1>, vector<8x1xf32>
    %46 = vector.shape_cast %45 : vector<8x1xf32> to vector<1x8x1xf32>
    %cst_18 = arith.constant dense<0.000000e+00> : vector<1xf32>
    %47 = vector.multi_reduction <add>, %46, %cst_18 [1, 2] : vector<1x8x1xf32> to vector<1xf32>
    %48 = vector.shape_cast %47 : vector<1xf32> to vector<1x1x1xf32>
    %49 = vector.extract %48[0, 0, 0] : f32 from vector<1x1x1xf32>
    %50 = arith.addf %39, %49 : f32
    %51 = vector.shape_cast %27 : vector<1x2xf32> to vector<1x1x2xf32>
    %cst_19 = arith.constant dense<0.000000e+00> : vector<1xf32>
    %52 = vector.multi_reduction <add>, %51, %cst_19 [1, 2] : vector<1x1x2xf32> to vector<1xf32>
    %53 = vector.shape_cast %52 : vector<1xf32> to vector<1x1x1xf32>
    %54 = vector.extract %53[0, 0, 0] : f32 from vector<1x1x1xf32>
    %55 = arith.subf %54, %50 : f32
    %cst_20 = arith.constant 5.000000e-01 : f32
    %56 = arith.mulf %cst_20, %55 : f32
    %cst_21 = arith.constant 2.000000e+00 : f32
    %57 = arith.divf %56, %cst_21 : f32
    %c0_22 = arith.constant 0 : index
    %58 = memref.load %arg4[%c0_22] : memref<1xf32, #tpu.memory_space<smem>>
    memref.store %57, %arg4[%c0_22] : memref<1xf32, #tpu.memory_space<smem>>
    return
  }
}

</mosaic_0001>

<bundles_post_ra>
// kernel: _aux_head_loss_jit.1
= control target key start
LH: loop header
LB: loop body
LE: loop exit
PB: predicated region body
PF: predicated region fallthrough
CT: control target
= control target key end

     0   :  { %9 = vsyncpa [#allocation4], 0  ;;  %s541_s0 = inlined_call_operand.vmem [shape: s32[2], index: 0, kind: input, shape index: {}]   ;;  %s542_s1 = inlined_call_operand.vmem [shape: bf16[48,512], index: 1, kind: input, shape index: {}]   ;;  %s543_s2 = inlined_call_operand.vmem [shape: bf16[8,48], index: 2, kind: input, shape index: {}]   ;;  %s544_s3 = inlined_call_operand.vmem [shape: f32[8,9], index: 3, kind: input, shape index: {}]   ;;  %s545_s4 = inlined_call_operand.hbm [shape: f32[1], index: 4, kind: output, shape index: {}]  }
   0x1   :  { %10 = vsyncpa [#allocation3], 0  ;;  %s17_s17 = sshll.u32 %s541_s0, 4  ;;  %s18_s17 = int_to_ptr.vmem [resolvable:$true] %s17_s17 }
   0x2   :  { %s432_s18 = scalar_lea.vmem %s18_s17, 16  ;;  %p437_p1 = scmp.lt.s32.totalorder %s18_s17, %s18_s17 }
   0x3   :  { %p433_p0 = scmp.ne.s32.totalorder %s18_s17, %s432_s18  ;;  %p438_p2 = scmp.lt.s32.totalorder %s432_s18, %s432_s18 }
   0x5   :  { %p439_p3 = por %p438_p2, %p437_p1 }
   0x7   :  { %p440_p4 = pnand %p439_p3, %p433_p0 }
   0x9   :  { %443 = shalt.err (!%p440_p4)
}
   0xa   :  { %s456_s19 = smov [#allocation2]  }
   0xb   :  { %20 = dma.vmem_to_smem %s18_s17, 16, %s456_s19, [#allocation4]  }
   0xc   :  { %452 = dma.done.wait [#allocation4], 16  }
   0xd   :  { %453 = vsyncadd [#allocation4], 4294967280 }
   0xe   :  { %30 = sfence }
   0xf   :  { %v410_v0 = vld [vmem:[%s542_s1 + $0x44] ss:$16 sps:$4 sm:$0xff]   ;;  %v412_v1 = vld [vmem:[%s542_s1 + $0x4c] ss:$16 sps:$4 sm:$0xff]   ;;  %v457_v2 = vmov 0   ;;  %vm105_vm0 = vcmask 392192   ;;  %v304_v35 = vlaneseq }
  0x10   :  { %141 = vmatprep.mubr.bf16.mxu0 %v457_v2  ;;  %182 = vmatprep.mubr.bf16.mxu1 %v457_v2  ;;  %v414_v3 = vld [vmem:[%s542_s1 + $0x40] ss:$16 sps:$4 sm:$0xff]   ;;  %v415_v4 = vld [vmem:[%s542_s1 + $0x48] ss:$16 sps:$4 sm:$0xff]   ;;  %v416_v5 = vld [vmem:[%s542_s1 + $0x24] ss:$16 sps:$4 sm:$0xff]  }
  0x11   :  { %119 = vmatprep.subr.bf16.mxu0 %v410_v0  ;;  %160 = vmatprep.subr.bf16.mxu1 %v412_v1  ;;  %v418_v6 = vld [vmem:[%s542_s1 + $0x2c] ss:$16 sps:$4 sm:$0xff]   ;;  %v420_v7 = vld [vmem:[%s542_s1 + $0x20] ss:$16 sps:$4 sm:$0xff]   ;;  %v421_v8 = vld [vmem:[%s542_s1 + $0x28] ss:$16 sps:$4 sm:$0xff]  }
  0x12   :  { %120 = vmatpush1.bf16.msra.mxu0 %v414_v3  ;;  %161 = vmatpush1.bf16.msra.mxu1 %v415_v4  ;;  %v422_v9 = vld [vmem:[%s542_s1 + $0x4] ss:$16 sps:$4 sm:$0xff]   ;;  %v424_v10 = vld [vmem:[%s542_s1 + $0xc] ss:$16 sps:$4 sm:$0xff]   ;;  %v426_v11 = vld [vmem:[%s542_s1] ss:$16 sps:$4 sm:$0xff]  }
  0x13   :  { %121 = vmatprep.subr.bf16.mxu0 %v416_v5  ;;  %162 = vmatprep.subr.bf16.mxu1 %v418_v6  ;;  %v427_v12 = vld [vmem:[%s542_s1 + $0x8] ss:$16 sps:$4 sm:$0xff]   ;;  %v32_v13 = vld [vmem:[%s543_s2] sm:$0xf]  ;;  %v458_v28 = vmov 0.0   ;;  %vm459_vm1 = vmmov 0  }
  0x14   :  { %v204_v29 = vld [vmem:[%s544_s3] sm:$0xff]  ;;  %v460_v30 = vmov 8   ;;  %vm201_vm2 = vcmask 7168   ;;  %vm210_vm3 = vcmask 64512   ;;  %s387_s19 = sld [smem:[#allocation2 + $0x1]]  ;;  %v305_v36 = vshrl.u32 %v304_v35, 7 }
  0x15   :  { %408 = vset.pattern.permute.xlu1 %v460_v30  ;;  %409 = vset.pattern.permute.xlu0 %v460_v30  ;;  %s306_s20 = sld [smem:[#allocation2]]  ;;  %vm283_vm4 = vcmask 15360   ;;  %s461_s3 = smov 127   ;;  %vm340_vm7 = vcmask 8192  }
  0x16   :  { %122 = vmatpush1.bf16.msra.mxu0 %v420_v7  ;;  %163 = vmatpush1.bf16.msra.mxu1 %v421_v8  ;;  %s462_s27 = smov [#allocation5]  }
  0x17   :  { %123 = vmatprep.subr.bf16.mxu0 %v422_v9  ;;  %164 = vmatprep.subr.bf16.mxu1 %v424_v10 }
  0x18   :  { %207 = vperm.xlu1 %408, %v204_v29  }
  0x1a   :  { %124 = vmatpush1.bf16.msra.mxu0 %v426_v11  ;;  %165 = vmatpush1.bf16.msra.mxu1 %v427_v12  ;;  %v322_v37 = vstv %s387_s19 }
  0x1b   :  { %390 = vmatprep.subr.mxu0 %v458_v28  ;;  %v307_v38 = vstv %s306_s20  ;;  %vm323_vm5 = vcmp.eq.s32.totalorder %v305_v36, %v322_v37 }
  0x1c   :  { %vm308_vm6 = vcmp.eq.s32.totalorder %v305_v36, %v307_v38 }
  0x1d   :  { %384 = vmatmul.mubr.msk.bf16.vlgmr.msra.gmra.mxu0 %vm105_vm0, %v32_v13  ;;  %385 = vmatmul.mubr.msk.bf16.vlgmr.msra.gmra.mxu1 %vm105_vm0, %v32_v13 }
  0x1e   :  { %392 = vmatprep.mubr.msk.f32.mxu0 %vm459_vm1, %v458_v28 }
  0x93   :  { %v208_v39 = vpop.permute.xlu1 %207 }
  0xdd   :  { %v143_v14 = vpop.f32.mrf.mxu0  ;;  %v184_v15 = vpop.f32.mrf.mxu1 }
  0xde   :  { %v191_v18 = vmax.f32 %v143_v14, 0.0  ;;  %v193_v22 = vmax.f32 %v184_v15, 0.0 }
  0xdf   :  { %v145_v16 = vpop.f32.mrf.mxu0  ;;  %v186_v17 = vpop.f32.mrf.mxu1 }
  0xe0   :  { %v192_v19 = vmax.f32 %v145_v16, 0.0  ;;  %v194_v23 = vmax.f32 %v186_v17, 0.0 }
  0xe1   :  { %v147_v20 = vpop.f32.mrf.mxu0  ;;  %v188_v21 = vpop.f32.mrf.mxu1 }
  0xe2   :  { %v195_v24 = vadd.f32 %v192_v19, %v191_v18  ;;  %v198_v27 = vadd.f32 %v194_v23, %v193_v22 }
  0xe3   :  { %v148_v25 = vpop.f32.mrf.mxu0  ;;  %v189_v26 = vpop.f32.mrf.mxu1 }
  0xe4   :  { %196 = vadd.xlane.f32.xlu0 %v195_v24 }
  0xe8   :  { %199 = vadd.xlane.f32.xlu0 %v198_v27 }
 0x16d   :  { %v197_v31 = vpop.xlane.xlu0 %196 }
 0x171   :  { %v200_v32 = vpop.xlane.xlu0 %199 }
 0x172   :  { %v202_v33 = vsel %vm201_vm2, %v197_v31, %v200_v32 }
 0x173   :  { %v203_v34 = vmul.f32 0.00390625, %v202_v33 }
 0x175   :  { %391 = vmatpush3.msra.mxu0 %v203_v34 }
 0x176   :  { %393 = vmatmul.mubr.msk.f32.vlgmr.msra.gmra.mxu0 %vm210_vm3, %v204_v29 }
 0x236   :  { %v279_v40 = vpop.f32.mrf.mxu0 }
 0x237   :  { %v280_v41 = vadd.f32 %v279_v40, %v208_v39 }
 0x238   :  { %v394_v42 = vpop.f32.mrf.mxu0 }
 0x239   :  { %v284_v43 = vsel %vm283_vm4, %v280_v41, -inf  ;;  %v324_v44 = vsel %vm323_vm5, %v280_v41, 0.0  ;;  %v309_v45 = vsel %vm308_vm6, %v280_v41, 0.0 }
 0x23a   :  { %v285_v46 = vrot.slane %v284_v43, 4  ;;  %326 = vrot.lane.b32.xlu1 %v324_v44, %s461_s3  ;;  %v310_v47 = vsel %vm201_vm2, %v309_v45, 0.0 }
 0x23b   :  { %311 = vadd.xlane.f32.xlu0 %v310_v47 }
 0x23c   :  { %v286_v48 = vmax.f32 %v284_v43, %v285_v46 }
 0x23e   :  { %v287_v49 = vrot.slane %v286_v48, 2 }
 0x240   :  { %v288_v50 = vmax.f32 %v286_v48, %v287_v49 }
 0x242   :  { %v289_v51 = vrot.slane %v288_v50, 1 }
 0x244   :  { %v290_v52 = vmax.f32 %v288_v50, %v289_v51 }
 0x246   :  { %v291_v53 = vsub.f32 %v280_v41, %v290_v52 }
 0x248   :  { %v292_v54 = vmul.f32 1.442695, %v291_v53 }
 0x24a   :  { %428 = vpow2.f32 %v292_v54 }
 0x257   :  { %v429_v55 = vpop.eup %428 }
 0x258   :  { %v294_v56 = vsel %vm283_vm4, %v429_v55, 0.0 }
 0x259   :  { %v295_v57 = vrot.slane %v294_v56, 4 }
 0x25b   :  { %v296_v58 = vadd.f32 %v295_v57, %v294_v56 }
 0x25d   :  { %v297_v59 = vrot.slane %v296_v58, 2 }
 0x25f   :  { %v298_v60 = vadd.f32 %v297_v59, %v296_v58 }
 0x261   :  { %v299_v61 = vrot.slane %v298_v60, 1 }
 0x263   :  { %v300_v62 = vadd.f32 %v299_v61, %v298_v60 }
 0x265   :  { %430 = vlog2.f32 %v300_v62 }
 0x272   :  { %v431_v63 = vpop.eup %430 }
 0x273   :  { %v302_v0 = vmul.f32 0.6931472, %v431_v63 }
 0x275   :  { %v303_v1 = vadd.f32 %v302_v0, %v290_v52 }
 0x277   :  { %v341_v2 = vsel %vm340_vm7, %v303_v1, 0.0 }
 0x278   :  { %342 = vadd.xlane.f32.xlu0 %v341_v2 }
 0x2ac   :  { %v327_v3 = vpop.permute.xlu1 %326 }
 0x2ad   :  { %v329_v4 = vsel %vm201_vm2, %v327_v3, 0.0 }
 0x2ae   :  { %330 = vadd.xlane.f32.xlu1 %v329_v4 }
 0x2c4   :  { %v312_v5 = vpop.xlane.xlu0 %311 }
 0x2c5   :  { %v313_v6 = vrot.slane %v312_v5, 4 }
 0x2c7   :  { %v314_v7 = vadd.f32 %v313_v6, %v312_v5 }
 0x2c9   :  { %v315_v8 = vrot.slane %v314_v7, 2 }
 0x2cb   :  { %v316_v9 = vadd.f32 %v315_v8, %v314_v7 }
 0x2cd   :  { %v317_v10 = vrot.slane %v316_v9, 1 }
 0x2cf   :  { %v318_v11 = vadd.f32 %v317_v10, %v316_v9 }
 0x2d1   :  { %395 = vpush %v318_v11 }
 0x301   :  { %v343_v12 = vpop.xlane.xlu0 %342 }
 0x302   :  { %v344_v13 = vrot.slane %v343_v12, 4  ;;  %s396_s21 = spop %395 }
 0x304   :  { %v345_v14 = vadd.f32 %v344_v13, %v343_v12 }
 0x306   :  { %v346_v15 = vrot.slane %v345_v14, 2 }
 0x308   :  { %v347_v19 = vadd.f32 %v346_v15, %v345_v14 }
 0x30a   :  { %v348_v22 = vrot.slane %v347_v19, 1 }
 0x30c   :  { %v349_v25 = vadd.f32 %v348_v22, %v347_v19 }
 0x337   :  { %v331_v16 = vpop.xlane.xlu1 %330 }
 0x338   :  { %v332_v17 = vrot.slane %v331_v16, 4 }
 0x33a   :  { %v333_v18 = vadd.f32 %v332_v17, %v331_v16 }
 0x33c   :  { %v334_v20 = vrot.slane %v333_v18, 2 }
 0x33e   :  { %v335_v21 = vadd.f32 %v334_v20, %v333_v18 }
 0x340   :  { %v336_v23 = vrot.slane %v335_v21, 1 }
 0x342   :  { %v337_v24 = vadd.f32 %v336_v23, %v335_v21 }
 0x344   :  { %397 = vpush %v337_v24 }
 0x345   :  { %399 = vpush %v349_v25 }
 0x375   :  { %s398_s22 = spop %397 }
 0x376   :  { %s339_s23 = sadd.f32 %s398_s22, %s396_s21  ;;  %s400_s0 = spop %399 }
 0x378   :  { %s351_s24 = ssub.f32 %s400_s0, %s339_s23 }
 0x37a   :  { %s352_s25 = smul.f32 0.5, %s351_s24 }
 0x37c   :  { %s355_s26 = smul.f32 0.5, %s352_s25 }
 0x37e   :  { %357 = sst [smem:[#allocation5]] %s355_s26 }
 0x37f   :  { %365 = dma.smem_to_hbm %s462_s27, 16, %s545_s4, [#allocation3]  }
 0x380   :  { %454 = dma.done.wait [#allocation3], 16  }
 0x381   :  { %455 = vsyncadd [#allocation3], 4294967280 }
 0x382   :  { %369 = sfence }
 0x383   :  { %370 = vsyncpa [#allocation3], 1 }
 0x384   :  { %371 = vsyncpa [#allocation4], 1 }

</bundles_post_ra>
